<compile_context>
chip_gen: v6e
topology: v6e:2x2x1
jax: 0.10.0
libtpu: 0.0.40
codegen_flags: <defaults>
</compile_context>

<pallas_src>
import math

import jax
import jax.numpy as jnp
from jax.experimental import pallas as pl
from jax.experimental.pallas import tpu as pltpu


# ----------------------------------------------------------------------------
# Fused Pallas kernel: avgpool -> linear1 -> ReLU -> (dropout) -> linear2 -> sigmoid
# ----------------------------------------------------------------------------
def _transfer_kernel(x_ref, w1_ref, b1_ref, w2_ref, b2_ref, o_ref):
    # x_ref : (B, C, L) f32, VMEM
    # w1_ref: (C, C)    f32, VMEM   -- linear1 weight, already stored as (in, out)
    # b1_ref: (1, C)    f32, VMEM   -- linear1 bias (lane-dense row)
    # w2_ref: (1, C)    f32, VMEM   -- linear2 weight as a lane-dense row
    # b2_ref: (1,)      f32, SMEM   -- linear2 bias scalar
    # o_ref : (B, 1)    f32, VMEM
    x = x_ref[...]                                            # (B, C, L)
    inv_l = 1.0 / x.shape[-1]
    pooled = jnp.sum(x, axis=-1) * inv_l                      # AdaptiveAvgPool1d(1) -> (B, C)

    # linear1 + bias + ReLU (single MXU matmul, f32 accumulation)
    h = jnp.dot(pooled, w1_ref[...], preferred_element_type=jnp.float32)
    h = jnp.maximum(h + b1_ref[...], 0.0)                     # (B, C)

    # Dropout(p=0.5): identity in inference mode.

    # linear2 (+bias): multiply by the (1, C) weight row and reduce over lanes.
    z = jnp.sum(h * w2_ref[...], axis=-1, keepdims=True) + b2_ref[0]   # (B, 1)

    # sigmoid (EUP exp + reciprocal)
    o_ref[...] = (1.0 / (1.0 + jnp.exp(-z))).astype(o_ref.dtype)


# ----------------------------------------------------------------------------
# Wrapper
# ----------------------------------------------------------------------------
def transfer_forward(params, x):
    """x: (B, C, L) float32  ->  (B, 1) float32 (sigmoid probabilities)."""
    B, C, L = x.shape
    return pl.pallas_call(
        _transfer_kernel,
        out_shape=jax.ShapeDtypeStruct((B, 1), x.dtype),
        in_specs=[
            pl.BlockSpec(memory_space=pltpu.MemorySpace.VMEM),   # x
            pl.BlockSpec(memory_space=pltpu.MemorySpace.VMEM),   # w1 (in, out)
            pl.BlockSpec(memory_space=pltpu.MemorySpace.VMEM),   # b1 (1, C)
            pl.BlockSpec(memory_space=pltpu.MemorySpace.VMEM),   # w2 (1, C)
            pl.BlockSpec(memory_space=pltpu.MemorySpace.SMEM),   # b2 (1,)
        ],
        out_specs=pl.BlockSpec(memory_space=pltpu.MemorySpace.VMEM),
    )(x, params["w1"], params["b1"], params["w2"], params["b2"])


# ----------------------------------------------------------------------------
# Parameter init (matches PyTorch _init_weights: xavier_uniform weights, zero bias)
# ----------------------------------------------------------------------------
def xavier_uniform(key, shape):
    fan_out, fan_in = shape                     # torch Linear weight is (out, in)
    a = math.sqrt(6.0 / (fan_in + fan_out))
    return jax.random.uniform(key, shape, jnp.float32, -a, a)


def init_params(key, in_channels=64):
    k1, k2 = jax.random.split(key)
    w1 = xavier_uniform(k1, (in_channels, in_channels))   # (out, in) torch layout
    w2 = xavier_uniform(k2, (1, in_channels))              # (out=1, in)
    return {
        # stored pre-transposed / lane-dense so the forward does no layout work:
        "w1": jnp.transpose(w1),                            # (in, out)
        "b1": jnp.zeros((1, in_channels), jnp.float32),     # (1, C)
        "w2": w2,                                           # (1, C) row
        "b2": jnp.zeros((1,), jnp.float32),                 # scalar bias
    }


# ----------------------------------------------------------------------------
# Pure-JAX reference (for correctness check)
# ----------------------------------------------------------------------------
def transfer_reference(params, x):
    pooled = jnp.mean(x, axis=-1)                                        # (B, C)
    h = jax.nn.relu(pooled @ params["w1"] + params["b1"])                # (B, C)
    z = jnp.sum(h * params["w2"], axis=-1, keepdims=True) + params["b2"][0]
    return jax.nn.sigmoid(z)                                             # (B, 1)


if __name__ == "__main__":
    key = jax.random.PRNGKey(0)
    k_data, k_params = jax.random.split(key)

    B, C, L = 2, 64, 128
    x = jax.random.normal(k_data, (B, C, L), jnp.float32)
    params = init_params(k_params, in_channels=C)

    out = jax.jit(transfer_forward)(params, x)
    jax.block_until_ready(out)

    assert out.shape == (B, 1), out.shape
    assert out.dtype == jnp.float32
    ref = transfer_reference(params, x)
    assert jnp.allclose(out, ref, atol=1e-5, rtol=1e-5), (out, ref)
    print("KERNEL_OK")
</pallas_src>

<mosaic_0001>
module attributes {stable_mosaic.version = 11 : i64} {
  func.func @_transfer_kernel(%arg0: memref<2x64x128xf32, #tpu.memory_space<vmem>>, %arg1: memref<64x64xf32, #tpu.memory_space<vmem>>, %arg2: memref<1x64xf32, #tpu.memory_space<vmem>>, %arg3: memref<1x64xf32, #tpu.memory_space<vmem>>, %arg4: memref<1xf32, #tpu.memory_space<smem>>, %arg5: memref<2x1xf32, #tpu.memory_space<vmem>>) attributes {dimension_semantics = [], scalar_prefetch = 0 : i64, scratch_operands = 0 : i64, tpu.core_type = #tpu.core_type<tc>} {
    %c0 = arith.constant 0 : index
    %c0_0 = arith.constant 0 : index
    %c0_1 = arith.constant 0 : index
    %0 = vector.load %arg0[%c0, %c0_0, %c0_1] : memref<2x64x128xf32, #tpu.memory_space<vmem>>, vector<2x64x128xf32>
    %cst = arith.constant dense<0.000000e+00> : vector<2x64xf32>
    %1 = vector.multi_reduction <add>, %0, %cst [2] : vector<2x64x128xf32> to vector<2x64xf32>
    %cst_2 = arith.constant 7.812500e-03 : f32
    %2 = vector.broadcast %cst_2 : f32 to vector<2x64xf32>
    %3 = arith.mulf %1, %2 : vector<2x64xf32>
    %c0_3 = arith.constant 0 : index
    %c0_4 = arith.constant 0 : index
    %4 = vector.load %arg1[%c0_3, %c0_4] : memref<64x64xf32, #tpu.memory_space<vmem>>, vector<64x64xf32>
    %cst_5 = arith.constant dense<0.000000e+00> : vector<2x64xf32>
    %5 = tpu.matmul %3, %4, %cst_5 {dimension_numbers = #tpu.dot_dimension_numbers<[1], [0], [0], [1], [0, 0, 1, 1], [], []>} : vector<2x64xf32>, vector<64x64xf32>, vector<2x64xf32> -> vector<2x64xf32>
    %c0_6 = arith.constant 0 : index
    %c0_7 = arith.constant 0 : index
    %6 = vector.load %arg2[%c0_6, %c0_7] : memref<1x64xf32, #tpu.memory_space<vmem>>, vector<1x64xf32>
    %7 = vector.broadcast %6 : vector<1x64xf32> to vector<2x64xf32>
    %8 = arith.addf %5, %7 : vector<2x64xf32>
    %cst_8 = arith.constant 0.000000e+00 : f32
    %9 = vector.broadcast %cst_8 : f32 to vector<2x64xf32>
    %10 = arith.maximumf %8, %9 : vector<2x64xf32>
    %c0_9 = arith.constant 0 : index
    %c0_10 = arith.constant 0 : index
    %11 = vector.load %arg3[%c0_9, %c0_10] : memref<1x64xf32, #tpu.memory_space<vmem>>, vector<1x64xf32>
    %12 = vector.broadcast %11 : vector<1x64xf32> to vector<2x64xf32>
    %13 = arith.mulf %10, %12 : vector<2x64xf32>
    %cst_11 = arith.constant dense<0.000000e+00> : vector<2xf32>
    %14 = vector.multi_reduction <add>, %13, %cst_11 [1] : vector<2x64xf32> to vector<2xf32>
    %15 = vector.shape_cast %14 : vector<2xf32> to vector<2x1xf32>
    %c0_12 = arith.constant 0 : index
    %16 = memref.load %arg4[%c0_12] : memref<1xf32, #tpu.memory_space<smem>>
    %17 = vector.broadcast %16 : f32 to vector<2x1xf32>
    %18 = arith.addf %15, %17 : vector<2x1xf32>
    %cst_13 = arith.constant 0.000000e+00 : f32
    %19 = vector.broadcast %cst_13 : f32 to vector<2x1xf32>
    %20 = arith.subf %19, %18 : vector<2x1xf32>
    %21 = math.exp %20 : vector<2x1xf32>
    %cst_14 = arith.constant 1.000000e+00 : f32
    %22 = vector.broadcast %cst_14 : f32 to vector<2x1xf32>
    %23 = arith.addf %22, %21 : vector<2x1xf32>
    %cst_15 = arith.constant 1.000000e+00 : f32
    %24 = vector.broadcast %cst_15 : f32 to vector<2x1xf32>
    %25 = arith.divf %24, %23 : vector<2x1xf32>
    %c0_16 = arith.constant 0 : index
    %c0_17 = arith.constant 0 : index
    %26 = vector.load %arg5[%c0_16, %c0_17] : memref<2x1xf32, #tpu.memory_space<vmem>>, vector<2x1xf32>
    tpu.vector_store %arg5[%c0_16, %c0_17], %25 {strides = array<i32>} : memref<2x1xf32, #tpu.memory_space<vmem>>, vector<2x1xf32>,
    return
  }
}

</mosaic_0001>

<bundles_post_ra>
// kernel: transfer_forward.1
= control target key start
LH: loop header
LB: loop body
LE: loop exit
PB: predicated region body
PF: predicated region fallthrough
CT: control target
= control target key end

     0   :  { %11 = vsyncpa [#allocation4], 0  ;;  %s494_s0 = inlined_call_operand.hbm [shape: f32[2,64,128], index: 0, kind: input, shape index: {}]   ;;  %s495_s1 = inlined_call_operand.hbm [shape: f32[64,64], index: 1, kind: input, shape index: {}]   ;;  %s496_s2 = inlined_call_operand.vmem [shape: f32[1,64], index: 2, kind: input, shape index: {}]   ;;  %s497_s3 = inlined_call_operand.vmem [shape: f32[1,64], index: 3, kind: input, shape index: {}]   ;;  %s498_s4 = inlined_call_operand.<no memory space> [shape: f32[1], index: 4, kind: input, shape index: {}]   ;;  %s499_s5 = inlined_call_operand.vmem [shape: f32[2,1], index: 5, kind: output, shape index: {}]  }
   0x1   :  { %12 = vsyncpa [#allocation6], 0  ;;  %s428_s18 = smov [#allocation3]  }
   0x2   :  { %s18_s19 = sshll.u32 %s428_s18, 4  ;;  %s19_s19 = int_to_ptr.vmem [resolvable:$true] %s18_s19 }
   0x3   :  { %s392_s20 = scalar_lea.vmem %s19_s19, 2048  ;;  %p397_p1 = scmp.lt.s32.totalorder %s19_s19, %s19_s19 }
   0x4   :  { %p393_p0 = scmp.ne.s32.totalorder %s19_s19, %s392_s20  ;;  %p398_p2 = scmp.lt.s32.totalorder %s392_s20, %s392_s20 }
   0x6   :  { %p399_p3 = por %p398_p2, %p397_p1 }
   0x8   :  { %p400_p4 = pnand %p399_p3, %p393_p0 }
   0xa   :  { %403 = shalt.err (!%p400_p4)
}
   0xb   :  { %s429_s21 = smov 128   ;;  %s430_s22 = smov 8  }
   0xc   :  { %24 = dma.hbm_to_vmem [thread:$0]  %s494_s0, 2048, %s19_s19, [#allocation4], %s429_s21, %s429_s21, %s430_s22  }
   0xd   :  { %s431_s25 = smov [#allocation5]  }
   0xe   :  { %s30_s26 = sshll.u32 %s431_s25, 4  ;;  %s31_s26 = int_to_ptr.vmem [resolvable:$true] %s30_s26 }
   0xf   :  { %s412_s27 = scalar_lea.vmem %s31_s26, 1024  ;;  %p417_p6 = scmp.lt.s32.totalorder %s31_s26, %s31_s26 }
  0x10   :  { %p413_p5 = scmp.ne.s32.totalorder %s31_s26, %s412_s27  ;;  %p418_p7 = scmp.lt.s32.totalorder %s412_s27, %s412_s27 }
  0x12   :  { %p419_p8 = por %p418_p7, %p417_p6 }
  0x14   :  { %p420_p9 = pnand %p419_p8, %p413_p5 }
  0x16   :  { %423 = shalt.err (!%p420_p9)
}
  0x17   :  { %36 = dma.hbm_to_vmem [thread:$0]  %s495_s1, 1024, %s31_s26, [#allocation6], %s429_s21, %s429_s21, %s430_s22  }
  0x18   :  { %424 = dma.done.wait [#allocation4], 2048  }
  0x19   :  { %425 = vsyncadd [#allocation4], 4294965248 }
  0x1a   :  { %426 = dma.done.wait [#allocation6], 1024  }
  0x1b   :  { %427 = vsyncadd [#allocation6], 4294966272  ;;  %v57_v0 = vld [vmem:[#allocation3 + $0x40] sm:$0xff]  ;;  %v58_v2 = vld [vmem:[#allocation3 + $0x48] sm:$0xff]  ;;  %v432_v17 = vmov 0.0   ;;  %vm433_vm0 = vmmov 0   ;;  %v144_v29 = vlaneseq }
  0x1c   :  { %v49_v1 = vld [vmem:[#allocation3] sm:$0xff]  ;;  %81 = vadd.xlane.f32.xlu1 %v57_v0  ;;  %v50_v3 = vld [vmem:[#allocation3 + $0x8] sm:$0xff]  ;;  %v59_v4 = vld [vmem:[#allocation3 + $0x50] sm:$0xff]  ;;  %355 = vmatprep.subr.mxu0 %v432_v17  ;;  %vm155_vm1 = vcmask 130112   ;;  %vm162_vm2 = vcmask 195712   ;;  %vm169_vm3 = vcmask 261312  }
  0x1d   :  { %65 = vadd.xlane.f32.xlu0 %v49_v1  ;;  %v51_v5 = vld [vmem:[#allocation3 + $0x10] sm:$0xff]  ;;  %v60_v6 = vld [vmem:[#allocation3 + $0x58] sm:$0xff]  ;;  %v61_v8 = vld [vmem:[#allocation3 + $0x60] sm:$0xff]  ;;  %371 = vmatprep.mubr.msk.f32.mxu0 %vm433_vm0, %v432_v17  ;;  %v145_v32 = vand.u32 127, %v144_v29  ;;  %v147_v33 = vshrl.u32 %v144_v29, 7  ;;  %vm176_vm4 = vcmask 326912  }
  0x1e   :  { %v52_v7 = vld [vmem:[#allocation3 + $0x18] sm:$0xff]  ;;  %v53_v9 = vld [vmem:[#allocation3 + $0x20] sm:$0xff]  ;;  %v62_v10 = vld [vmem:[#allocation3 + $0x68] sm:$0xff]  ;;  %vm183_vm5 = vcmask 392512   ;;  %vm190_vm6 = vcmask 458112   ;;  %vm197_vm7 = vcmask 523712  }
  0x1f   :  { %v54_v11 = vld [vmem:[#allocation3 + $0x28] sm:$0xff]  ;;  %v63_v12 = vld [vmem:[#allocation3 + $0x70] sm:$0xff]  ;;  %v64_v14 = vld [vmem:[#allocation3 + $0x78] sm:$0xff]  ;;  %v150_v36 = vadd.s32 4294967288, %v145_v32  ;;  %v157_v37 = vadd.s32 4294967280, %v145_v32  ;;  %v164_v38 = vadd.s32 4294967272, %v145_v32  ;;  %v148_v40 = vsub.s32 %v145_v32, %v147_v33 }
  0x20   :  { %83 = vadd.xlane.f32.xlu1 %v58_v2  ;;  %v55_v13 = vld [vmem:[#allocation3 + $0x30] sm:$0xff]  ;;  %v56_v15 = vld [vmem:[#allocation3 + $0x38] sm:$0xff]  ;;  %v118_v19 = vld [vmem:[#allocation5 + $0x28] sm:$0xff]  ;;  %v171_v39 = vadd.s32 4294967264, %v145_v32  ;;  %v178_v45 = vadd.s32 4294967256, %v145_v32  ;;  %v185_v47 = vadd.s32 4294967248, %v145_v32 }
  0x21   :  { %67 = vadd.xlane.f32.xlu0 %v50_v3  ;;  %v120_v16 = vld [vmem:[#allocation5 + $0x38] sm:$0xff]  ;;  %v119_v18 = vld [vmem:[#allocation5 + $0x30] sm:$0xff]  ;;  %v117_v20 = vld [vmem:[#allocation5 + $0x20] sm:$0xff]  ;;  %v153_v43 = vsub.s32 %v150_v36, %v147_v33  ;;  %v160_v44 = vsub.s32 %v157_v37, %v147_v33  ;;  %v167_v46 = vsub.s32 %v164_v38, %v147_v33  ;;  %v192_v63 = vadd.s32 4294967240, %v145_v32 }
  0x22   :  { %356 = vmatpush3.msra.mxu0 %v120_v16  ;;  %v116_v21 = vld [vmem:[#allocation5 + $0x18] sm:$0xff]  ;;  %v115_v22 = vld [vmem:[#allocation5 + $0x10] sm:$0xff]  ;;  %v114_v23 = vld [vmem:[#allocation5 + $0x8] sm:$0xff]  ;;  %v174_v50 = vsub.s32 %v171_v39, %v147_v33  ;;  %v181_v59 = vsub.s32 %v178_v45, %v147_v33  ;;  %v188_v62 = vsub.s32 %v185_v47, %v147_v33  ;;  %vm238_vm8 = vcmask 1041409  }
  0x23   :  { %357 = vmatprep.subr.mxu0 %v432_v17  ;;  %v113_v24 = vld [vmem:[#allocation5] sm:$0xff]  ;;  %v195_v16 = vsub.s32 %v192_v63, %v147_v33  ;;  %vm240_vm9 = vcmask 523264   ;;  %vm322_vm10 = vcmask 517120   ;;  %vm335_vm11 = vcmask 1024  }
  0x24   :  { %85 = vadd.xlane.f32.xlu1 %v59_v4  ;;  %358 = vmatpush3.msra.mxu0 %v119_v18 }
  0x25   :  { %69 = vadd.xlane.f32.xlu0 %v51_v5  ;;  %359 = vmatprep.subr.mxu0 %v432_v17 }
  0x26   :  { %360 = vmatpush3.msra.mxu0 %v118_v19 }
  0x27   :  { %361 = vmatprep.subr.mxu0 %v432_v17 }
  0x28   :  { %87 = vadd.xlane.f32.xlu1 %v60_v6  ;;  %362 = vmatpush3.msra.mxu0 %v117_v20 }
  0x29   :  { %71 = vadd.xlane.f32.xlu0 %v52_v7  ;;  %363 = vmatprep.subr.mxu0 %v432_v17 }
  0x2a   :  { %364 = vmatpush3.msra.mxu0 %v116_v21 }
  0x2b   :  { %365 = vmatprep.subr.mxu0 %v432_v17 }
  0x2c   :  { %89 = vadd.xlane.f32.xlu1 %v61_v8  ;;  %366 = vmatpush3.msra.mxu0 %v115_v22 }
  0x2d   :  { %73 = vadd.xlane.f32.xlu0 %v53_v9  ;;  %367 = vmatprep.subr.mxu0 %v432_v17 }
  0x2e   :  { %368 = vmatpush3.msra.mxu0 %v114_v23 }
  0x2f   :  { %369 = vmatprep.subr.mxu0 %v432_v17 }
  0x30   :  { %91 = vadd.xlane.f32.xlu1 %v62_v10  ;;  %370 = vmatpush3.msra.mxu0 %v113_v24 }
  0x31   :  { %75 = vadd.xlane.f32.xlu0 %v54_v11 }
  0x34   :  { %93 = vadd.xlane.f32.xlu1 %v63_v12 }
  0x35   :  { %77 = vadd.xlane.f32.xlu0 %v55_v13 }
  0x38   :  { %95 = vadd.xlane.f32.xlu1 %v64_v14 }
  0x39   :  { %79 = vadd.xlane.f32.xlu0 %v56_v15 }
  0xa5   :  { %v82_v25 = vpop.xlane.xlu1 %81 }
  0xa6   :  { %v66_v26 = vpop.xlane.xlu0 %65  ;;  %v105_v51 = vmul.f32 0.0078125, %v82_v25 }
  0xa7   :  { %v97_v52 = vmul.f32 0.0078125, %v66_v26 }
  0xa8   :  { %v202_v4 = vrot.slane %v105_v51, %v148_v40 }
  0xa9   :  { %v84_v27 = vpop.xlane.xlu1 %83  ;;  %v149_v5 = vrot.slane %v97_v52, %v148_v40 }
  0xaa   :  { %v68_v28 = vpop.xlane.xlu0 %67  ;;  %v106_v48 = vmul.f32 0.0078125, %v84_v27 }
  0xab   :  { %v98_v49 = vmul.f32 0.0078125, %v68_v28 }
  0xac   :  { %v206_v0 = vrot.slane %v106_v48, %v153_v43 }
  0xad   :  { %v86_v30 = vpop.xlane.xlu1 %85  ;;  %v154_v1 = vrot.slane %v98_v49, %v153_v43 }
  0xae   :  { %v70_v31 = vpop.xlane.xlu0 %69  ;;  %v107_v53 = vmul.f32 0.0078125, %v86_v30  ;;  %v207_v17 = vsel %vm155_vm1, %v206_v0, %v202_v4 }
  0xaf   :  { %v99_v54 = vmul.f32 0.0078125, %v70_v31  ;;  %v156_v18 = vsel %vm155_vm1, %v154_v1, %v149_v5 }
  0xb0   :  { %v211_v6 = vrot.slane %v107_v53, %v160_v44 }
  0xb1   :  { %v88_v34 = vpop.xlane.xlu1 %87  ;;  %v161_v7 = vrot.slane %v99_v54, %v160_v44 }
  0xb2   :  { %v72_v35 = vpop.xlane.xlu0 %71  ;;  %v108_v57 = vmul.f32 0.0078125, %v88_v34  ;;  %v212_v21 = vsel %vm162_vm2, %v211_v6, %v207_v17 }
  0xb3   :  { %v100_v58 = vmul.f32 0.0078125, %v72_v35  ;;  %v163_v22 = vsel %vm162_vm2, %v161_v7, %v156_v18 }
  0xb4   :  { %v216_v10 = vrot.slane %v108_v57, %v167_v46 }
  0xb5   :  { %v90_v41 = vpop.xlane.xlu1 %89  ;;  %v168_v11 = vrot.slane %v100_v58, %v167_v46  ;;  %v345_v46 = vld [vmem:[%s497_s3] ss:$0 sm:$0xff] }
  0xb6   :  { %v74_v42 = vpop.xlane.xlu0 %73  ;;  %v109_v60 = vmul.f32 0.0078125, %v90_v41  ;;  %v217_v27 = vsel %vm169_vm3, %v216_v10, %v212_v21 }
  0xb7   :  { %v101_v61 = vmul.f32 0.0078125, %v74_v42  ;;  %v170_v28 = vsel %vm169_vm3, %v168_v11, %v163_v22  ;;  %v343_v42 = vld [vmem:[%s496_s2] ss:$0 sm:$0xff] }
  0xb8   :  { %v221_v14 = vrot.slane %v109_v60, %v174_v50 }
  0xb9   :  { %v92_v55 = vpop.xlane.xlu1 %91  ;;  %v175_v15 = vrot.slane %v101_v61, %v174_v50  ;;  %v327_v50 = vstv %s498_s4 }
  0xba   :  { %v76_v56 = vpop.xlane.xlu0 %75  ;;  %v110_v2 = vmul.f32 0.0078125, %v92_v55  ;;  %v222_v31 = vsel %vm176_vm4, %v221_v14, %v217_v27 }
  0xbb   :  { %v102_v3 = vmul.f32 0.0078125, %v76_v56  ;;  %v177_v32 = vsel %vm176_vm4, %v175_v15, %v170_v28 }
  0xbc   :  { %v226_v19 = vrot.slane %v110_v2, %v181_v59 }
  0xbd   :  { %v94_v8 = vpop.xlane.xlu1 %93  ;;  %v182_v20 = vrot.slane %v102_v3, %v181_v59 }
  0xbe   :  { %v78_v9 = vpop.xlane.xlu0 %77  ;;  %v111_v12 = vmul.f32 0.0078125, %v94_v8  ;;  %v227_v33 = vsel %vm183_vm5, %v226_v19, %v222_v31 }
  0xbf   :  { %v103_v13 = vmul.f32 0.0078125, %v78_v9  ;;  %v184_v34 = vsel %vm183_vm5, %v182_v20, %v177_v32 }
  0xc0   :  { %v231_v23 = vrot.slane %v111_v12, %v188_v62 }
  0xc1   :  { %v189_v24 = vrot.slane %v103_v13, %v188_v62  ;;  %v96_v25 = vpop.xlane.xlu1 %95 }
  0xc2   :  { %v80_v26 = vpop.xlane.xlu0 %79  ;;  %v112_v29 = vmul.f32 0.0078125, %v96_v25  ;;  %v232_v37 = vsel %vm190_vm6, %v231_v23, %v227_v33 }
  0xc3   :  { %v104_v30 = vmul.f32 0.0078125, %v80_v26  ;;  %v191_v38 = vsel %vm190_vm6, %v189_v24, %v184_v34 }
  0xc4   :  { %v236_v35 = vrot.slane %v112_v29, %v195_v16 }
  0xc5   :  { %v196_v36 = vrot.slane %v104_v30, %v195_v16 }
  0xc6   :  { %v237_v40 = vsel %vm197_vm7, %v236_v35, %v232_v37 }
  0xc7   :  { %v198_v39 = vsel %vm197_vm7, %v196_v36, %v191_v38 }
  0xc8   :  { %v239_v41 = vsel %vm238_vm8, %v237_v40, %v198_v39 }
  0xc9   :  { %372 = vmatmul.mubr.msk.f32.vlgmr.msra.gmra.mxu0 %vm240_vm9, %v239_v41 }
 0x189   :  { %v309_v43 = vpop.f32.mrf.mxu0 }
 0x18a   :  { %v310_v44 = vadd.f32 %v343_v42, %v309_v43 }
 0x18b   :  { %v373_v45 = vpop.f32.mrf.mxu0 }
 0x18c   :  { %v313_v47 = vmax.f32 %v310_v44, 0.0 }
 0x18e   :  { %v321_v48 = vmul.f32 %v345_v46, %v313_v47 }
 0x190   :  { %v323_v49 = vsel %vm322_vm10, %v321_v48, 0.0 }
 0x191   :  { %324 = vadd.xlane.f32.xlu0 %v323_v49 }
 0x21a   :  { %v325_v51 = vpop.xlane.xlu0 %324 }
 0x21b   :  { %v328_v52 = vadd.f32 %v327_v50, %v325_v51 }
 0x21d   :  { %v329_v53 = vsub.f32 0.0, %v328_v52 }
 0x21f   :  { %v330_v54 = vmul.f32 1.442695, %v329_v53 }
 0x221   :  { %380 = vpow2.f32 %v330_v54 }
 0x22e   :  { %v381_v55 = vpop.eup %380 }
 0x22f   :  { %v332_v56 = vadd.f32 1.0, %v381_v55 }
 0x231   :  { %382 = vrcp.f32 %v332_v56 }
 0x23e   :  { %v383_v57 = vpop.eup %382 }
 0x23f   :  { %336 = vst.msk [vmem:[%s499_s5] sm:$0x3] %vm335_vm11, %v383_v57 }
 0x240   :  { %341 = vsyncpa [#allocation4], 1 }
 0x241   :  { %342 = vsyncpa [#allocation6], 1 }

</bundles_post_ra>
